<compile_context>
chip_gen: v7x
topology: tpu7x:2x2x1
jax: 0.10.0
libtpu: 0.0.40
codegen_flags: <defaults>
</compile_context>

<pallas_src>
import functools

import numpy as np
import jax
import jax.numpy as jnp
from jax.experimental import pallas as pl
from jax.experimental.pallas import tpu as pltpu

_LANE = 128
_SUBLANE = 8


def _round_up(x, m):
    return ((x + m - 1) // m) * m


def _posmmen_kernel(x_ref, w1_ref, b1_ref, w23_ref, b23_ref, o_ref, *, in_pad, h_pad):
    """One grid step = (modality m, batch tile i).

    h   = ReLU(x @ W1 + b1)
    y   = h @ [W2 | W3] + [b2 | b3]          (single MXU pass on shared h)
    out slab = [ h | ReLU(y[:, :In]) | tanh(y[:, In:]) ]   (lane-dense stores)
    """
    x = x_ref[...]                                                      # [tm, In_pad]
    h = jnp.dot(x, w1_ref[...], preferred_element_type=jnp.float32) + b1_ref[...]
    h = jnp.maximum(h, 0.0)                                             # [tm, H_pad] f32
    y = jnp.dot(h.astype(w23_ref.dtype), w23_ref[...],
                preferred_element_type=jnp.float32) + b23_ref[...]      # [tm, In_pad+Out_pad]
    # All slab offsets are multiples of 128 -> unmasked full-lane stores.
    o_ref[:, 0:h_pad] = h.astype(o_ref.dtype)
    o_ref[:, h_pad:h_pad + in_pad] = jnp.maximum(y[:, 0:in_pad], 0.0).astype(o_ref.dtype)
    o_ref[:, h_pad + in_pad:] = jnp.tanh(y[:, in_pad:]).astype(o_ref.dtype)


def _linear_params(key, in_features, out_features):
    """Deterministic PyTorch-style Linear init; weight stored as [in, out]."""
    kw, kb = jax.random.split(key)
    bound = 1.0 / float(np.sqrt(in_features))
    w = jax.random.uniform(kw, (in_features, out_features), jnp.float32,
                           minval=-bound, maxval=bound)
    b = jax.random.uniform(kb, (out_features,), jnp.float32,
                           minval=-bound, maxval=bound)
    return w, b


def make_ae_params(key, input_size, hidden_size, output_size):
    k1, k2, k3 = jax.random.split(key, 3)
    w1, b1 = _linear_params(k1, input_size, hidden_size)     # encoder
    w2, b2 = _linear_params(k2, hidden_size, input_size)     # decoder
    w3, b3 = _linear_params(k3, hidden_size, output_size)    # verb_transformation
    return (w1, b1, w2, b2, w3, b3)


def _ae_reference(x, params):
    """Pure-JAX reference of the AE forward (for correctness checking)."""
    w1, b1, w2, b2, w3, b3 = params
    hi = jax.lax.Precision.HIGHEST
    h = jnp.maximum(jnp.dot(x, w1, precision=hi) + b1, 0.0)
    out = jnp.maximum(jnp.dot(h, w2, precision=hi) + b2, 0.0)
    vt = jnp.tanh(jnp.dot(h, w3, precision=hi) + b3)
    return h, out, vt


class PosMmenPallas:
    """PosMmen with vis_input_size != 2048 and text_input_size != 1024
    (both branches are the plain AE architecture)."""

    def __init__(self, key, vis_input_size, text_input_size,
                 vis_hidden_size, text_hidden_size, output_size,
                 matmul_dtype=jnp.float32):
        # TODO(synk): VisAE branch (only taken when vis_input_size==2048 /
        # text_input_size==1024) is not exercised at these synthetic sizes.
        del vis_hidden_size  # unused by the AE branch
        self.in_v, self.in_t = vis_input_size, text_input_size
        self.hid, self.out = text_hidden_size, output_size
        # Common lane-aligned padded dims for both modalities.
        self.in_pad = _round_up(max(vis_input_size, text_input_size), _LANE)
        self.h_pad = _round_up(text_hidden_size, _LANE)
        self.out_pad = _round_up(output_size, _LANE)
        # Set matmul_dtype=jnp.bfloat16 for production-scale shapes (2x MXU rate
        # on v5e/v6e/v7x); accumulation stays f32 in the kernel.
        self.matmul_dtype = matmul_dtype

        kv, kt = jax.random.split(key)
        self.vis_raw = make_ae_params(kv, vis_input_size, text_hidden_size, output_size)
        self.text_raw = make_ae_params(kt, text_input_size, text_hidden_size, output_size)

        v = self._pack_modality(self.vis_raw)
        t = self._pack_modality(self.text_raw)
        self.w1 = jnp.stack([v[0], t[0]])     # [2, In_pad, H_pad]
        self.b1 = jnp.stack([v[1], t[1]])     # [2, 1, H_pad]         (f32)
        self.w23 = jnp.stack([v[2], t[2]])    # [2, H_pad, In_pad+Out_pad]
        self.b23 = jnp.stack([v[3], t[3]])    # [2, 1, In_pad+Out_pad] (f32)

    def _pack_modality(self, params):
        """Zero-pad to lane-aligned dims and fuse W2|W3 (b2|b3) along outputs."""
        w1, b1, w2, b2, w3, b3 = params
        in_pad, h_pad, out_pad = self.in_pad, self.h_pad, self.out_pad
        W1 = jnp.zeros((in_pad, h_pad), jnp.float32).at[:w1.shape[0], :w1.shape[1]].set(w1)
        B1 = jnp.zeros((1, h_pad), jnp.float32).at[0, :b1.shape[0]].set(b1)
        W2p = jnp.zeros((h_pad, in_pad), jnp.float32).at[:w2.shape[0], :w2.shape[1]].set(w2)
        W3p = jnp.zeros((h_pad, out_pad), jnp.float32).at[:w3.shape[0], :w3.shape[1]].set(w3)
        W23 = jnp.concatenate([W2p, W3p], axis=1)
        B23 = jnp.zeros((1, in_pad + out_pad), jnp.float32)
        B23 = B23.at[0, :b2.shape[0]].set(b2)
        B23 = B23.at[0, in_pad:in_pad + b3.shape[0]].set(b3)
        return (W1.astype(self.matmul_dtype), B1,
                W23.astype(self.matmul_dtype), B23)

    def _tile_and_limit(self, B):
        """Pick batch tile + vmem limit within a budget safe for v7x (64 MiB VMEM)."""
        mm_bytes = np.dtype(self.matmul_dtype).itemsize
        n_pad = self.in_pad + self.out_pad
        slab_w = self.h_pad + n_pad
        weight_bytes = ((self.in_pad * self.h_pad + self.h_pad * n_pad) * mm_bytes
                        + (self.h_pad + n_pad) * 4)
        budget = 48 << 20  # leaves headroom on v7x (64 MiB/TC); trivially fits v5e/v6e

        def est(t):
            # double-buffered inputs/outputs + resident weights (also 2x for safety)
            return 2 * (weight_bytes + t * self.in_pad * mm_bytes + t * slab_w * 4)

        tm = 128 if B >= 128 else _round_up(B, _SUBLANE)
        while tm > _SUBLANE and est(tm) > budget:
            tm = max(_SUBLANE, _round_up(tm // 2, _SUBLANE))
        b_pad = _round_up(B, tm)
        vmem_limit = int(min(max(2 * est(tm), 16 << 20), budget))
        return tm, b_pad, vmem_limit

    def _run_kernel(self, x, tm, vmem_limit):
        b_pad = x.shape[1]
        in_pad, h_pad = self.in_pad, self.h_pad
        n_pad = in_pad + self.out_pad
        slab_w = h_pad + n_pad
        grid = (2, b_pad // tm)
        kernel = functools.partial(_posmmen_kernel, in_pad=in_pad, h_pad=h_pad)
        return pl.pallas_call(
            kernel,
            out_shape=jax.ShapeDtypeStruct((2, b_pad, slab_w), jnp.float32),
            grid_spec=pltpu.PrefetchScalarGridSpec(
                num_scalar_prefetch=0,
                grid=grid,
                in_specs=[
                    pl.BlockSpec((None, tm, in_pad), lambda m, i: (m, i, 0)),     # x
                    pl.BlockSpec((None, in_pad, h_pad), lambda m, i: (m, 0, 0)),  # W1
                    pl.BlockSpec((None, 1, h_pad), lambda m, i: (m, 0, 0)),       # b1
                    pl.BlockSpec((None, h_pad, n_pad), lambda m, i: (m, 0, 0)),   # W2|W3
                    pl.BlockSpec((None, 1, n_pad), lambda m, i: (m, 0, 0)),       # b2|b3
                ],
                out_specs=pl.BlockSpec((None, tm, slab_w), lambda m, i: (m, i, 0)),
            ),
            compiler_params=pltpu.CompilerParams(
                dimension_semantics=("parallel", "parallel"),
                vmem_limit_bytes=vmem_limit,
            ),
        )(x, self.w1, self.b1, self.w23, self.b23)

    @functools.partial(jax.jit, static_argnums=0)
    def __call__(self, vis_x, text_x):
        B = vis_x.shape[0]
        tm, b_pad, vmem_limit = self._tile_and_limit(B)
        # Pad + stack both modalities into one [2, B_pad, In_pad] input.
        x = jnp.zeros((2, b_pad, self.in_pad), self.matmul_dtype)
        x = x.at[0, :B, :self.in_v].set(vis_x.astype(self.matmul_dtype))
        x = x.at[1, :B, :self.in_t].set(text_x.astype(self.matmul_dtype))

        slab = self._run_kernel(x, tm, vmem_limit)   # [2, B_pad, H_pad+In_pad+Out_pad]

        r0 = self.h_pad                    # start of reconstruction columns
        t0 = self.h_pad + self.in_pad      # start of verb-transformation columns
        vh = slab[0, :B, :self.hid]
        vr = slab[0, :B, r0:r0 + self.in_v]
        vo = slab[0, :B, t0:t0 + self.out]
        th = slab[1, :B, :self.hid]
        tr = slab[1, :B, r0:r0 + self.in_t]
        to = slab[1, :B, t0:t0 + self.out]
        return vh, vr, vo, th, tr, to


if __name__ == "__main__":
    key = jax.random.PRNGKey(0)
    k_params, k_vis, k_text = jax.random.split(key, 3)

    B = 8
    VIS_IN, TEXT_IN = 32, 48        # != 2048 / != 1024 -> AE branch for both
    VIS_HID, TEXT_HID = 64, 32      # text_hidden_size is the AE hidden size
    OUT = 16

    model = PosMmenPallas(k_params, VIS_IN, TEXT_IN, VIS_HID, TEXT_HID, OUT)

    vis_x = jax.random.normal(k_vis, (B, VIS_IN), jnp.float32)
    text_x = jax.random.normal(k_text, (B, TEXT_IN), jnp.float32)

    outs = model(vis_x, text_x)
    outs = jax.block_until_ready(outs)

    vh, vr, vo, th, tr, to = outs
    assert vh.shape == (B, TEXT_HID) and vr.shape == (B, VIS_IN) and vo.shape == (B, OUT)
    assert th.shape == (B, TEXT_HID) and tr.shape == (B, TEXT_IN) and to.shape == (B, OUT)

    # Correctness vs pure-JAX reference of the PyTorch module.
    ref_v = _ae_reference(vis_x, model.vis_raw)
    ref_t = _ae_reference(text_x, model.text_raw)
    for got, ref in zip(outs, (*ref_v, *ref_t)):
        err = float(jnp.max(jnp.abs(got - ref)))
        assert jnp.allclose(got, ref, atol=2e-3, rtol=2e-3), f"max abs err {err}"

    print("KERNEL_OK")
</pallas_src>

<mosaic_0001>
module attributes {stable_mosaic.version = 11 : i64} {
  func.func @_posmmen_kernel(%arg0: i32, %arg1: i32, %arg2: memref<1x8x128xf32, #tpu.memory_space<vmem>>, %arg3: memref<1x128x128xf32, #tpu.memory_space<vmem>>, %arg4: memref<1x1x128xf32, #tpu.memory_space<vmem>>, %arg5: memref<1x128x256xf32, #tpu.memory_space<vmem>>, %arg6: memref<1x1x256xf32, #tpu.memory_space<vmem>>, %arg7: memref<1x8x384xf32, #tpu.memory_space<vmem>>) attributes {dimension_semantics = [#tpu.dimension_semantics<parallel>, #tpu.dimension_semantics<parallel>], iteration_bounds = array<i64: 2, 1>, scalar_prefetch = 0 : i64, scratch_operands = 0 : i64, tpu.core_type = #tpu.core_type<tc>, window_params = [{transform_indices = @transform_0, window_bounds = array<i64: 1, 8, 128>}, {transform_indices = @transform_1, window_bounds = array<i64: 1, 128, 128>}, {transform_indices = @transform_2, window_bounds = array<i64: 1, 1, 128>}, {transform_indices = @transform_3, window_bounds = array<i64: 1, 128, 256>}, {transform_indices = @transform_4, window_bounds = array<i64: 1, 1, 256>}, {transform_indices = @transform_5, window_bounds = array<i64: 1, 8, 384>}]} {
    %c0 = arith.constant 0 : index
    %c0_0 = arith.constant 0 : index
    %c0_1 = arith.constant 0 : index
    %0 = vector.load %arg2[%c0, %c0_0, %c0_1] : memref<1x8x128xf32, #tpu.memory_space<vmem>>, vector<1x8x128xf32>
    %1 = vector.shape_cast %0 : vector<1x8x128xf32> to vector<8x128xf32>
    %c0_2 = arith.constant 0 : index
    %c0_3 = arith.constant 0 : index
    %c0_4 = arith.constant 0 : index
    %2 = vector.load %arg3[%c0_2, %c0_3, %c0_4] : memref<1x128x128xf32, #tpu.memory_space<vmem>>, vector<1x128x128xf32>
    %3 = vector.shape_cast %2 : vector<1x128x128xf32> to vector<128x128xf32>
    %cst = arith.constant dense<0.000000e+00> : vector<8x128xf32>
    %4 = tpu.matmul %1, %3, %cst {dimension_numbers = #tpu.dot_dimension_numbers<[1], [0], [0], [1], [0, 0, 1, 1], [], []>} : vector<8x128xf32>, vector<128x128xf32>, vector<8x128xf32> -> vector<8x128xf32>
    %c0_5 = arith.constant 0 : index
    %c0_6 = arith.constant 0 : index
    %c0_7 = arith.constant 0 : index
    %5 = vector.load %arg4[%c0_5, %c0_6, %c0_7] : memref<1x1x128xf32, #tpu.memory_space<vmem>>, vector<1x1x128xf32>
    %6 = vector.shape_cast %5 : vector<1x1x128xf32> to vector<1x128xf32>
    %7 = vector.broadcast %6 : vector<1x128xf32> to vector<8x128xf32>
    %8 = arith.addf %4, %7 : vector<8x128xf32>
    %cst_8 = arith.constant 0.000000e+00 : f32
    %9 = vector.broadcast %cst_8 : f32 to vector<8x128xf32>
    %10 = arith.maximumf %8, %9 : vector<8x128xf32>
    %c0_9 = arith.constant 0 : index
    %c0_10 = arith.constant 0 : index
    %c0_11 = arith.constant 0 : index
    %11 = vector.load %arg5[%c0_9, %c0_10, %c0_11] : memref<1x128x256xf32, #tpu.memory_space<vmem>>, vector<1x128x256xf32>
    %12 = vector.shape_cast %11 : vector<1x128x256xf32> to vector<128x256xf32>
    %cst_12 = arith.constant dense<0.000000e+00> : vector<8x256xf32>
    %13 = tpu.matmul %10, %12, %cst_12 {dimension_numbers = #tpu.dot_dimension_numbers<[1], [0], [0], [1], [0, 0, 1, 1], [], []>} : vector<8x128xf32>, vector<128x256xf32>, vector<8x256xf32> -> vector<8x256xf32>
    %c0_13 = arith.constant 0 : index
    %c0_14 = arith.constant 0 : index
    %c0_15 = arith.constant 0 : index
    %14 = vector.load %arg6[%c0_13, %c0_14, %c0_15] : memref<1x1x256xf32, #tpu.memory_space<vmem>>, vector<1x1x256xf32>
    %15 = vector.shape_cast %14 : vector<1x1x256xf32> to vector<1x256xf32>
    %16 = vector.broadcast %15 : vector<1x256xf32> to vector<8x256xf32>
    %17 = arith.addf %13, %16 : vector<8x256xf32>
    %c0_16 = arith.constant 0 : index
    %c0_17 = arith.constant 0 : index
    %c0_18 = arith.constant 0 : index
    %18 = vector.load %arg7[%c0_16, %c0_17, %c0_18] : memref<1x8x384xf32, #tpu.memory_space<vmem>>, vector<1x8x128xf32>
    %19 = vector.shape_cast %18 : vector<1x8x128xf32> to vector<8x128xf32>
    %20 = vector.shape_cast %10 : vector<8x128xf32> to vector<1x8x128xf32>
    tpu.vector_store %arg7[%c0_16, %c0_17, %c0_18], %20 {strides = array<i32>} : memref<1x8x384xf32, #tpu.memory_space<vmem>>, vector<1x8x128xf32>,
    %21 = vector.extract_strided_slice %17 {offsets = [0, 0], sizes = [8, 128], strides = [1, 1]} : vector<8x256xf32> to vector<8x128xf32>
    %cst_19 = arith.constant 0.000000e+00 : f32
    %22 = vector.broadcast %cst_19 : f32 to vector<8x128xf32>
    %23 = arith.maximumf %21, %22 : vector<8x128xf32>
    %c0_20 = arith.constant 0 : index
    %c0_21 = arith.constant 0 : index
    %c128 = arith.constant 128 : index
    %24 = vector.load %arg7[%c0_20, %c0_21, %c128] : memref<1x8x384xf32, #tpu.memory_space<vmem>>, vector<1x8x128xf32>
    %25 = vector.shape_cast %24 : vector<1x8x128xf32> to vector<8x128xf32>
    %26 = vector.shape_cast %23 : vector<8x128xf32> to vector<1x8x128xf32>
    tpu.vector_store %arg7[%c0_20, %c0_21, %c128], %26 {strides = array<i32>} : memref<1x8x384xf32, #tpu.memory_space<vmem>>, vector<1x8x128xf32>,
    %27 = vector.extract_strided_slice %17 {offsets = [0, 128], sizes = [8, 128], strides = [1, 1]} : vector<8x256xf32> to vector<8x128xf32>
    %28 = math.tanh %27 : vector<8x128xf32>
    %c0_22 = arith.constant 0 : index
    %c0_23 = arith.constant 0 : index
    %c256 = arith.constant 256 : index
    %29 = vector.load %arg7[%c0_22, %c0_23, %c256] : memref<1x8x384xf32, #tpu.memory_space<vmem>>, vector<1x8x128xf32>
    %30 = vector.shape_cast %29 : vector<1x8x128xf32> to vector<8x128xf32>
    %31 = vector.shape_cast %28 : vector<8x128xf32> to vector<1x8x128xf32>
    tpu.vector_store %arg7[%c0_22, %c0_23, %c256], %31 {strides = array<i32>} : memref<1x8x384xf32, #tpu.memory_space<vmem>>, vector<1x8x128xf32>,
    return
  }
  func.func @transform_0(%arg0: i32, %arg1: i32) -> (i32, i32, i32) {
    %c0_i32 = arith.constant 0 : i32
    %c0_i32_0 = arith.constant 0 : i32
    return %arg0, %arg1, %c0_i32 : i32, i32, i32
  }
  func.func @transform_1(%arg0: i32, %arg1: i32) -> (i32, i32, i32) {
    %c0_i32 = arith.constant 0 : i32
    %c0_i32_0 = arith.constant 0 : i32
    %c0_i32_1 = arith.constant 0 : i32
    return %arg0, %c0_i32, %c0_i32_0 : i32, i32, i32
  }
  func.func @transform_2(%arg0: i32, %arg1: i32) -> (i32, i32, i32) {
    %c0_i32 = arith.constant 0 : i32
    %c0_i32_0 = arith.constant 0 : i32
    %c0_i32_1 = arith.constant 0 : i32
    return %arg0, %c0_i32, %c0_i32_0 : i32, i32, i32
  }
  func.func @transform_3(%arg0: i32, %arg1: i32) -> (i32, i32, i32) {
    %c0_i32 = arith.constant 0 : i32
    %c0_i32_0 = arith.constant 0 : i32
    %c0_i32_1 = arith.constant 0 : i32
    return %arg0, %c0_i32, %c0_i32_0 : i32, i32, i32
  }
  func.func @transform_4(%arg0: i32, %arg1: i32) -> (i32, i32, i32) {
    %c0_i32 = arith.constant 0 : i32
    %c0_i32_0 = arith.constant 0 : i32
    %c0_i32_1 = arith.constant 0 : i32
    return %arg0, %c0_i32, %c0_i32_0 : i32, i32, i32
  }
  func.func @transform_5(%arg0: i32, %arg1: i32) -> (i32, i32, i32) {
    %c0_i32 = arith.constant 0 : i32
    %c0_i32_0 = arith.constant 0 : i32
    return %arg0, %arg1, %c0_i32 : i32, i32, i32
  }
}

</mosaic_0001>

<bundles_post_ra>
// kernel: a_call__.1
= control target key start
LH: loop header
LB: loop body
LE: loop exit
PB: predicated region body
PF: predicated region fallthrough
CT: control target
= control target key end

     0   :  { %10 = vsyncpa [#allocation3], 0  ;;  %s1338_s0 = inlined_call_operand.vmem [shape: f32[2,8,128], index: 0, kind: input, shape index: {}]   ;;  %s1339_s1 = inlined_call_operand.hbm [shape: f32[2,128,128], index: 1, kind: input, shape index: {}]   ;;  %s1340_s2 = inlined_call_operand.vmem [shape: f32[2,1,128], index: 2, kind: input, shape index: {}]   ;;  %s1341_s3 = inlined_call_operand.hbm [shape: f32[2,128,256], index: 3, kind: input, shape index: {}]   ;;  %s1342_s4 = inlined_call_operand.vmem [shape: f32[2,1,256], index: 4, kind: input, shape index: {}]   ;;  %s1343_s5 = inlined_call_operand.vmem [shape: f32[2,8,384], index: 5, kind: output, shape index: {}]  }
   0x1   :  { %12 = vsyncpa [#allocation3 + $0x1], 0 }
   0x2   :  { %13 = vsyncpa [#allocation5], 0 }
   0x3   :  { %15 = vsyncpa [#allocation5 + $0x1], 0  ;;  %s1089_s18 = smov 0   ;;  %s1091_s19 = smov 0  }
   0x4   :  { %s1093_s20 = smov 0   ;;  %s1095_s21 = smov 0  }
   0x5   :  { %s1097_s22 = smov 0   ;;  %s1099_s23 = smov 0  }
   0x6 LB: > { %s735_s24 = sadd.s32 4294967295, %s1048_s23   ;;  %s33_s25 = sadd.s32 1, %s1044_s22  ;;  %s1048_s23 = sphi %s1099_s23, %s21_s23   ;;  %s1044_s22 = sphi %s1097_s22, %s1354_s22   ;;  %s1040_s21 = sphi %s1095_s21, %s1353_s21   ;;  %s1036_s20 = sphi %s1093_s20, %s1352_s20   ;;  %s1032_s19 = sphi %s1091_s19, %s1351_s19   ;;  %s1028_s18 = sphi %s1089_s18, %s1350_s18  }
   0x7   : > { %p35_p0 = scmp.ge.s32.totalorder %s33_s25, 2  ;;  %s68_s26 = sadd.s32 1, %s1036_s20 }
   0x8   : > { %p75_p1 = scmp.ne.s32.totalorder %s1036_s20, %s1032_s19  ;;  %p76_p2 = scmp.eq.s32.totalorder %s1048_s23, 0 }
   0x9   : > { %s1356_s25 = smov (%p35_p0, %s33_s25), 0  ;;  %p81_p4 = scmp.ne.s32.totalorder %s1032_s19, %s1028_s18 }
   0xa   : > { %p1125_p3 = por %p76_p2, %p75_p1  ;;  %s65_s28 = ssub.s32 %s1044_s22, %s1356_s25 }
   0xb   : > { %p82_p5 = scmp.eq.s32.totalorder %s735_s24, 0  ;;  %p66_p6 = scmp.eq.s32.totalorder %s65_s28, 0 }
   0xc   : > { %p876_p8 = scmp.lt.s32.totalorder %s1048_s23, 2  ;;  %s1141_s6 = sand.u32 1, %s1036_s20  }
   0xd   : > { %p1132_p7 = por %p82_p5, %p81_p4  ;;  %s754_s7 = sshll.u32 %s1044_s22, 11 }
   0xe   : > { %s1138_s30 = scalar_select %p66_p6, %s1036_s20, %s68_s26  }
   0xf   : > { %s1346_s29 = scalar_select %p1132_p7, 1, 0 }
  0x10   : > { %s739_s8 = sshll.u32 %s1141_s6, 7  ;;  %s1148_s11 = scalar_lea.hbm %s1339_s1, %s754_s7 }
  0x11   : > { %s225_s12 = scalar_lea.vmem [#allocation2], %s739_s8  ;;  %p1152_p9 = pnand %p876_p8, %p1125_p3 }
  0x12   : > { %s232_s13 = sshll.u32 %s225_s12, 4  ;;  %s222_s15 = scalar_lea.sflag [#allocation3], %s1141_s6  ;;  %s1156_s13 = int_to_ptr.vmem [resolvable:$true] %s232_s13 }
  0x13   : > { %s934_s16 = scalar_lea.hbm %s1148_s11, 2048  ;;  %p936_p11 = pneg %p1152_p9 }
  0x14   : > { %p935_p10 = scmp.ne.s32.totalorder %s1148_s11, %s934_s16  ;;  %s939_s24 = scalar_lea.hbm %s1339_s1, 4096 }
  0x15   : > { %p940_p0 = scmp.lt.u32.totalorder %s1148_s11, %s1339_s1  ;;  %p941_p1 = scmp.lt.u32.totalorder %s939_s24, %s934_s16 }
  0x16   : > { %p937_p12 = pnand %p936_p11, %p935_p10  ;;  %p943_p3 = scmp.lt.u32.totalorder %s934_s16, %s1148_s11 }
  0x17   : > { %p942_p2 = por %p941_p1, %p940_p0 }
  0x18   : > { %p938_p13 = pneg %p937_p12 }
  0x19   : > { %p944_p4 = por %p943_p3, %p942_p2 }
  0x1b   : > { %p945_p5 = pnand %p944_p4, %p938_p13 }
  0x1d   : > { %948 = shalt.err (!%p945_p5)
}
  0x1e   : > { %s949_s28 = scalar_lea.vmem %s1156_s13, 2048  ;;  %s1050_s7 = smov [#allocation2]  }
  0x1f   : > { %p950_p6 = scmp.ne.s32.totalorder %s1156_s13, %s949_s28  ;;  %s954_s8 = sshll.u32 %s1050_s7, 4  ;;  %s955_s8 = int_to_ptr.vmem [resolvable:$false] %s954_s8 }
  0x20   : > { %s956_s9 = scalar_lea.vmem %s955_s8, 4096  ;;  %p957_p12 = scmp.lt.s32.totalorder %s1156_s13, %s955_s8 }
  0x21   : > { %p952_p8 = pnand %p950_p6, %p936_p11  ;;  %p958_p0 = scmp.lt.s32.totalorder %s956_s9, %s949_s28 }
  0x23   : > { %p953_p10 = pneg %p952_p8  ;;  %p959_p1 = por %p958_p0, %p957_p12 }
  0x25   : > { %p960_p2 = pnand %p959_p1, %p953_p10 }
  0x27   : > { %963 = shalt.err (!%p960_p2)
}
  0x28   : > { %s1051_s10 = smov 128   ;;  %s1052_s12 = smov 8  }
  0x29   : > { %872 = dma.hbm_to_vmem [thread:$0]  (!%p1152_p9), %s1148_s11, 2048, %s1156_s13, %s222_s15, %s1051_s10, %s1051_s10, %s1052_s12  }
  0x2a   : > { %p745_p13 = scmp.ge.s32.totalorder %s1048_s23, 1  ;;  %p274_p3 = scmp.lt.s32.totalorder %s1048_s23, 3 }
  0x2b   : > { %s742_s16 = sshll.u32 %s1141_s6, 8  ;;  %s755_s18 = sshll.u32 %s1044_s22, 12 }
  0x2c   : > { %p1189_p4 = pnand %p745_p13, %p274_p3  ;;  %s252_s24 = scalar_lea.vmem [#allocation4], %s742_s16 }
  0x2d   : > { %s259_s26 = sshll.u32 %s252_s24, 4  ;;  %s1197_s7 = scalar_lea.hbm %s1341_s3, %s755_s18  ;;  %s1199_s26 = int_to_ptr.vmem [resolvable:$true] %s259_s26 }
  0x2e   : > { %s249_s11 = scalar_lea.sflag [#allocation5], %s1141_s6  ;;  %s964_s13 = scalar_lea.hbm %s1197_s7, 4096 }
  0x2f   : > { %p965_p5 = scmp.ne.s32.totalorder %s1197_s7, %s964_s13  ;;  %s969_s9 = scalar_lea.hbm %s1341_s3, 8192 }
  0x30   : > { %p970_p10 = scmp.lt.u32.totalorder %s1197_s7, %s1341_s3  ;;  %p971_p12 = scmp.lt.u32.totalorder %s969_s9, %s964_s13 }
  0x31   : > { %p967_p6 = pnand %p965_p5, %p936_p11  ;;  %p973_p1 = scmp.lt.u32.totalorder %s964_s13, %s1197_s7 }
  0x32   : > { %p972_p0 = por %p971_p12, %p970_p10 }
  0x33   : > { %p968_p8 = pneg %p967_p6 }
  0x34   : > { %p974_p2 = por %p973_p1, %p972_p0 }
  0x36   : > { %p975_p13 = pnand %p974_p2, %p968_p8 }
  0x38   : > { %978 = shalt.err (!%p975_p13)
}
  0x39   : > { %s979_s16 = scalar_lea.vmem %s1199_s26, 4096  ;;  %s1053_s18 = smov [#allocation4]  }
  0x3a   : > { %p980_p3 = scmp.ne.s32.totalorder %s1199_s26, %s979_s16  ;;  %s984_s24 = sshll.u32 %s1053_s18, 4  ;;  %s985_s24 = int_to_ptr.vmem [resolvable:$false] %s984_s24 }
  0x3b   : > { %s986_s27 = scalar_lea.vmem %s985_s24, 8192  ;;  %p987_p7 = scmp.lt.s32.totalorder %s1199_s26, %s985_s24 }
  0x3c   : > { %p982_p5 = pnand %p980_p3, %p936_p11  ;;  %p988_p10 = scmp.lt.s32.totalorder %s986_s27, %s979_s16 }
  0x3e   : > { %p983_p6 = pneg %p982_p5  ;;  %p989_p12 = por %p988_p10, %p987_p7 }
  0x40   : > { %p990_p0 = pnand %p989_p12, %p983_p6 }
  0x42   : > { %993 = shalt.err (!%p990_p0)
}
  0x43   : > { %s1054_s28 = smov 256   ;;  %s1055_s13 = smov 16  }
  0x44   : > { %875 = dma.hbm_to_vmem [thread:$0]  (!%p1152_p9), %s1197_s7, 4096, %s1199_s26, %s249_s11, %s1054_s28, %s1054_s28, %s1055_s13  }
  0x45   : > { %278 = sbr.rel (%p1189_p4) target bundleno = 557 (0x22d), region = 40  ;;  %s280_s15 = sand.u32 (!%p1189_p4), 1, %s1032_s19  }
  0x46   : > { %s746_s8 = sshll.u32 (!%p1189_p4), %s280_s15, 7  ;;  %s281_s9 = scalar_lea.sflag (!%p1189_p4), [#allocation3], %s280_s15 }
  0x47   : > { %s1230_s10 = scalar_lea.vmem (!%p1189_p4), [#allocation2], %s746_s8  ;;  %p1349_p7 = scmp.ne.s32.totalorder (!%p1189_p4), %s1346_s29, 0 }
  0x4c   : > { %1019 = dma.done.wait (%p1349_p7), %s281_s9, 2048  }
  0x4d   : > { %1021 = vsyncadd (%p1349_p7), %s281_s9, 4294965248  ;;  %s747_s12 = sshll.u32 %s280_s15, 8  ;;  %s290_s14 = scalar_lea.sflag [#allocation5], %s280_s15 }
  0x4e   : > { %s1236_s6 = scalar_lea.vmem [#allocation4], %s747_s12 }
  0x4f   : > { %1023 = dma.done.wait (%p1349_p7), %s290_s14, 4096  }
  0x50   : > { %1025 = vsyncadd (%p1349_p7), %s290_s14, 4294963200  ;;  %v1056_v0 = vmov 0.0|0.0   ;;  %vm1057_vm0 = vmmov 0   ;;  %v1058_v1 = vmov 0.0   ;;  %v367_v2 = vld [vmem:[%s1230_s10] sm:$0xff]  ;;  %v368_v3 = vld [vmem:[%s1230_s10 + $0x8] sm:$0xff] }
  0x51   : > { %808 = vmatprep.subr.bf16.mxu0 %v1056_v0  ;;  %805 = vmatprep.mubr.msk.f32.mxu0 %vm1057_vm0, %v1058_v1  ;;  %v369_v4 = vld [vmem:[%s1230_s10 + $0x10] sm:$0xff]  ;;  %v809_v5 = vpack.c.bf16 %v368_v3, %v367_v2  ;;  %v370_v6 = vld [vmem:[%s1230_s10 + $0x18] sm:$0xff]  ;;  %v371_v8 = vld [vmem:[%s1230_s10 + $0x20] sm:$0xff]  ;;  %p343_p9 = scmp.lt.s32.totalorder %s1040_s21, 1 }
  0x52   : > { %569 = vmatprep.mubr.f32.mxu1 %v1058_v1  ;;  %v812_v7 = vpack.c.bf16 %v370_v6, %v369_v4  ;;  %v372_v9 = vld [vmem:[%s1230_s10 + $0x28] sm:$0xff]  ;;  %v373_v11 = vld [vmem:[%s1230_s10 + $0x30] sm:$0xff]  ;;  %v374_v12 = vld [vmem:[%s1230_s10 + $0x38] sm:$0xff] }
  0x53   : > { %810 = vmatpush3.bf16.msra.mxu0 %v809_v5  ;;  %v462_v10 = vld [vmem:[%s1236_s6 + $0x8] sm:$0xff]  ;;  %v464_v13 = vld [vmem:[%s1236_s6 + $0x18] sm:$0xff]  ;;  %v461_v14 = vld [vmem:[%s1236_s6] sm:$0xff]  ;;  %v815_v16 = vpack.c.bf16 %v372_v9, %v371_v8  ;;  %v818_v27 = vpack.c.bf16 %v374_v12, %v373_v11  ;;  %s1358_s21 = smov (!%p343_p9, %s1040_s21), 1 }
  0x54   : > { %811 = vmatprep.subr.bf16.mxu0 %v1056_v0  ;;  %v463_v15 = vld [vmem:[%s1236_s6 + $0x10] sm:$0xff]  ;;  %v832_v17 = vpack.c.bf16 %v464_v13, %v462_v10  ;;  %v466_v19 = vld [vmem:[%s1236_s6 + $0x28] sm:$0xff]  ;;  %v468_v20 = vld [vmem:[%s1236_s6 + $0x38] sm:$0xff]  ;;  %s748_s29 = sshll.u32 %s1358_s21, 3  ;;  %s352_s18 = scalar_lea.vmem %s1340_s2, %s1358_s21 }
  0x55   : > { %v834_v18 = vpack.c.bf16 %v463_v15, %v461_v14  ;;  %v465_v21 = vld [vmem:[%s1236_s6 + $0x20] sm:$0xff]  ;;  %v836_v22 = vpack.c.bf16 %v468_v20, %v466_v19  ;;  %v467_v23 = vld [vmem:[%s1236_s6 + $0x30] sm:$0xff]  ;;  %v470_v24 = vld [vmem:[%s1236_s6 + $0x48] sm:$0xff]  ;;  %s349_s7 = scalar_lea.vmem %s1338_s0, %s748_s29  ;;  %s864_s24 = smul.u32 24, %s1358_s21 }
  0x56   : > { %v472_v25 = vld [vmem:[%s1236_s6 + $0x58] sm:$0xff]  ;;  %833 = vmatprep.subr.bf16.mxu1 %v832_v17  ;;  %v838_v26 = vpack.c.bf16 %v467_v23, %v465_v21  ;;  %v375_v28 = vld [vmem:[%s1230_s10 + $0x40] sm:$0xff]  ;;  %v471_v31 = vld [vmem:[%s1236_s6 + $0x50] sm:$0xff]  ;;  %s749_s15 = sshll.u32 %s1358_s21, 1 }
  0x57   : > { %813 = vmatpush3.bf16.msra.mxu0 %v812_v7  ;;  %835 = vmatpush1.bf16.msra.mxu1 %v834_v18  ;;  %v840_v29 = vpack.c.bf16 %v472_v25, %v470_v24  ;;  %v469_v30 = vld [vmem:[%s1236_s6 + $0x40] sm:$0xff]  ;;  %v376_v32 = vld [vmem:[%s1230_s10 + $0x48] sm:$0xff]  ;;  %v476_v34 = vld [vmem:[%s1236_s6 + $0x78] sm:$0xff]  ;;  %s365_s13 = scalar_lea.vmem %s1343_s5, %s864_s24 }
  0x58   : > { %814 = vmatprep.subr.bf16.mxu0 %v1056_v0  ;;  %837 = vmatprep.subr.bf16.mxu1 %v836_v22  ;;  %v474_v33 = vld [vmem:[%s1236_s6 + $0x68] sm:$0xff]  ;;  %v842_v35 = vpack.c.bf16 %v471_v31, %v469_v30  ;;  %v821_v36 = vpack.c.bf16 %v376_v32, %v375_v28  ;;  %v377_v37 = vld [vmem:[%s1230_s10 + $0x50] sm:$0xff]  ;;  %v473_v39 = vld [vmem:[%s1236_s6 + $0x60] sm:$0xff] }
  0x59   : > { %v844_v38 = vpack.c.bf16 %v476_v34, %v474_v33  ;;  %v475_v40 = vld [vmem:[%s1236_s6 + $0x70] sm:$0xff]  ;;  %v378_v41 = vld [vmem:[%s1230_s10 + $0x58] sm:$0xff]  ;;  %v478_v42 = vld [vmem:[%s1236_s6 + $0x88] sm:$0xff] }
  0x5a   : > { %v480_v43 = vld [vmem:[%s1236_s6 + $0x98] sm:$0xff]  ;;  %v846_v44 = vpack.c.bf16 %v475_v40, %v473_v39  ;;  %v824_v45 = vpack.c.bf16 %v378_v41, %v377_v37  ;;  %v379_v46 = vld [vmem:[%s1230_s10 + $0x60] sm:$0xff]  ;;  %v479_v49 = vld [vmem:[%s1236_s6 + $0x90] sm:$0xff] }
  0x5b   : > { %816 = vmatpush3.bf16.msra.mxu0 %v815_v16  ;;  %839 = vmatpush1.bf16.msra.mxu1 %v838_v26  ;;  %v848_v47 = vpack.c.bf16 %v480_v43, %v478_v42  ;;  %v477_v48 = vld [vmem:[%s1236_s6 + $0x80] sm:$0xff]  ;;  %v380_v50 = vld [vmem:[%s1230_s10 + $0x68] sm:$0xff]  ;;  %v484_v52 = vld [vmem:[%s1236_s6 + $0xb8] sm:$0xff]  ;;  %v495_v16 = vlaneseq }
  0x5c   : > { %817 = vmatprep.subr.bf16.mxu0 %v1056_v0  ;;  %841 = vmatprep.subr.bf16.mxu1 %v840_v29  ;;  %v482_v51 = vld [vmem:[%s1236_s6 + $0xa8] sm:$0xff]  ;;  %v850_v53 = vpack.c.bf16 %v479_v49, %v477_v48  ;;  %v827_v54 = vpack.c.bf16 %v380_v50, %v379_v46  ;;  %v381_v55 = vld [vmem:[%s1230_s10 + $0x70] sm:$0xff]  ;;  %v481_v57 = vld [vmem:[%s1236_s6 + $0xa0] sm:$0xff] }
  0x5d   : > { %v852_v56 = vpack.c.bf16 %v484_v52, %v482_v51  ;;  %v483_v58 = vld [vmem:[%s1236_s6 + $0xb0] sm:$0xff]  ;;  %v382_v59 = vld [vmem:[%s1230_s10 + $0x78] sm:$0xff]  ;;  %v486_v60 = vld [vmem:[%s1236_s6 + $0xc8] sm:$0xff]  ;;  %v496_v17 = vshrl.u32 %v495_v16, 7  ;;  %s356_s10 = scalar_lea.vmem %s1342_s4, %s749_s15 }
  0x5e   : > { %v488_v61 = vld [vmem:[%s1236_s6 + $0xd8] sm:$0xff]  ;;  %v854_v62 = vpack.c.bf16 %v483_v58, %v481_v57  ;;  %v830_v63 = vpack.c.bf16 %v382_v59, %v381_v55  ;;  %v485_v2 = vld [vmem:[%s1236_s6 + $0xc0] sm:$0xff]  ;;  %v487_v3 = vld [vmem:[%s1236_s6 + $0xd0] sm:$0xff] }
  0x5f   : > { %819 = vmatpush3.bf16.msra.mxu0 %v818_v27  ;;  %843 = vmatpush1.bf16.msra.mxu1 %v842_v35  ;;  %v856_v1 = vpack.c.bf16 %v488_v61, %v486_v60  ;;  %v858_v4 = vpack.c.bf16 %v487_v3, %v485_v2  ;;  %v366_v5 = vld [vmem:[%s349_s7] sm:$0xff]  ;;  %v490_v6 = vld [vmem:[%s1236_s6 + $0xe8] sm:$0xff]  ;;  %v492_v7 = vld [vmem:[%s1236_s6 + $0xf8] sm:$0xff]  ;;  %v497_v18 = vsub.s32 0, %v496_v17  ;;  %v501_v20 = vsub.s32 1, %v496_v17 }
  0x60   : > { %820 = vmatprep.subr.bf16.mxu0 %v1056_v0  ;;  %845 = vmatprep.subr.bf16.mxu1 %v844_v38  ;;  %v860_v8 = vpack.c.bf16 %v492_v7, %v490_v6  ;;  %v489_v9 = vld [vmem:[%s1236_s6 + $0xe0] sm:$0xff]  ;;  %v491_v10 = vld [vmem:[%s1236_s6 + $0xf0] sm:$0xff] }
  0x61   : > { %v751_v11 = vld [vmem:[%s352_s18] ss:$0 sm:$0xff] }
  0x62   : > { %v493_v19 = vld [vmem:[%s356_s10] sm:$0x3] }
  0x63   : > { %822 = vmatpush3.bf16.msra.mxu0 %v821_v36  ;;  %847 = vmatpush1.bf16.msra.mxu1 %v846_v44  ;;  %v498_v21 = vrot.slane %v493_v19, %v497_v18  ;;  %v502_v22 = vrot.slane %v493_v19, %v501_v20 }
  0x64   : > { %823 = vmatprep.subr.bf16.mxu0 %v1056_v0  ;;  %849 = vmatprep.subr.bf16.mxu1 %v848_v47 }
  0x67   : > { %825 = vmatpush3.bf16.msra.mxu0 %v824_v45  ;;  %851 = vmatpush1.bf16.msra.mxu1 %v850_v53 }
  0x68   : > { %826 = vmatprep.subr.bf16.mxu0 %v1056_v0  ;;  %853 = vmatprep.subr.bf16.mxu1 %v852_v56 }
  0x6b   : > { %828 = vmatpush3.bf16.msra.mxu0 %v827_v54  ;;  %855 = vmatpush1.bf16.msra.mxu1 %v854_v62 }
  0x6c   : > { %829 = vmatprep.subr.bf16.mxu0 %v1056_v0  ;;  %857 = vmatprep.subr.bf16.mxu1 %v856_v1  ;;  %v862_v0 = vpack.c.bf16 %v491_v10, %v489_v9 }
  0x6f   : > { %831 = vmatpush3.bf16.msra.mxu0 %v830_v63  ;;  %859 = vmatpush1.bf16.msra.mxu1 %v858_v4 }
  0x70   : > { %861 = vmatprep.subr.bf16.mxu1 %v860_v8 }
  0x72   : > { %806 = vmatmul.mubr.f32.vlgmr.msra.gmra.mrb[0].mxu0 %v366_v5 }
  0x73   : > { %863 = vmatpush1.bf16.msra.mxu1 %v862_v0 }
 0x145   : > { %v456_v12 = vpop.f32.mrb[0].mxu0 }
 0x146   : > { %v457_v13 = vadd.f32 %v751_v11, %v456_v12  ;;  %v807_v14 = vpop.f32.mrb[1].mxu0 }
 0x148   : > { %v460_v15 = vmax.f32 %v457_v13, 0.0 }
 0x14a   : > { %576 = vst [vmem:[%s365_s13] sm:$0xff] %v460_v15  ;;  %570 = vmatmul.mubr.f32.vlgmr.msra.gmra.mrb[0].mxu1 %v460_v15 }
 0x21d   : > { %v571_v23 = vpop.f32.mrb[0].mxu1 }
 0x21e   : > { %v572_v24 = vadd.f32 %v571_v23, %v498_v21  ;;  %v573_v25 = vpop.f32.mrb[1].mxu1 }
 0x21f   : > { %v574_v26 = vadd.f32 %v573_v25, %v502_v22 }
 0x220   : > { %v577_v27 = vmax.f32 %v572_v24, 0.0 }
 0x221   : > { %932 = vtanh.f32 %v574_v26 }
 0x222   : > { %578 = vst [vmem:[%s365_s13 + $0x8] sm:$0xff] %v577_v27 }
 0x22b   : > { %v933_v28 = vpop.eup %932 }
 0x22c   : > { %580 = vst [vmem:[%s365_s13 + $0x10] sm:$0xff] %v933_v28 }
 0x22d PF: > { %s21_s23 = sadd.s32 1, %s1048_s23   ;;  %s1350_s18 = smov %s1032_s19 }
 0x22e   : > { %p18_p11 = scmp.ge.s32.totalorder %s21_s23, 4   ;;  %s1351_s19 = smov %s1036_s20 }
 0x22f   : > { %s1352_s20 = smov %s1138_s30  ;;  %s1353_s21 = smov %s1044_s22 }
 0x230   : > { %s1354_s22 = smov %s1356_s25  ;;  %20 = sbr.rel (!%p18_p11) target bundleno = 6 (0x6), region = 102 }
 0x237   :  { %610 = vsyncpa [#allocation3], 1 }
 0x238   :  { %612 = vsyncpa [#allocation3 + $0x1], 1 }
 0x239   :  { %613 = vsyncpa [#allocation5], 1 }
 0x23a   :  { %615 = vsyncpa [#allocation5 + $0x1], 1 }

</bundles_post_ra>
